<compile_context>
chip_gen: v7x
topology: tpu7x:2x2x1
jax: 0.10.0
libtpu: 0.0.40
codegen_flags: <defaults>
</compile_context>

<pallas_src>
import jax
import jax.numpy as jnp
from jax import lax
from jax.experimental import pallas as pl
from jax.experimental.pallas import tpu as pltpu


def _round_up(a, b):
    return (a + b - 1) // b * b


def _cdiv(a, b):
    return (a + b - 1) // b


def conv_block_kernel(xp_ref, xh_ref, w_ref, scale_ref, shift_ref, o_ref):
    """One (batch, lane-tile) step.

    xp_ref:    (4*C_in, TL)  bf16  residue-split input block: row r*C_in+ci, lane l ->
                                    x[n, ci, 4*(j*TL+l) + r]
    xh_ref:    (4*C_in, 128) bf16  halo: the next 128 input quads (only column 0 is used)
    w_ref:     (2*C_out_pad, 5*C_in) bf16  phase-expanded conv weight (even | odd pool phase)
    scale_ref: (2*C_out_pad, 1) f32  folded BN scale (per channel, tiled over both phases)
    shift_ref: (2*C_out_pad, 1) f32  folded BN shift
    o_ref:     (C_out_pad, TL)  f32  pooled output tile (L_pool on lanes -> lane-dense)
    """
    blk = xp_ref[...]                                    # (4*C_in, TL)
    halo = xh_ref[...]                                   # (4*C_in, 128)
    c_in = blk.shape[0] // 4

    # Residue-0 rows shifted left by one pool position: x[n, ci, 4*(j*TL+l+1)].
    shifted0 = jnp.concatenate([blk[:c_in, 1:], halo[:c_in, :1]], axis=1)   # (C_in, TL)
    p = jnp.concatenate([blk, shifted0], axis=0)                            # (5*C_in, TL)

    # Conv1d for both MaxPool phases in ONE MXU matmul (f32 accumulation).
    y = jnp.dot(w_ref[...], p, preferred_element_type=jnp.float32)   # (2*C_out_pad, TL)
    y = jnp.maximum(y, 0.0)                                           # ReLU
    y = y * scale_ref[...] + shift_ref[...]                           # BatchNorm (inference)

    half = y.shape[0] // 2
    o_ref[...] = jnp.maximum(y[:half, :], y[half:, :]).astype(o_ref.dtype)  # MaxPool1d(2,2)


def conv_block_forward(x, w, gamma, beta, running_mean, running_var,
                       kernel_size=3, stride=2, eps=1e-5, max_lane_tile=None):
    """x: (N, C_in, L) f32 (PyTorch Conv1d layout). Returns (N, C_out, L_pool) f32."""
    N, C_in, L = x.shape
    C_out = w.shape[0]
    K = kernel_size
    assert K == 3 and stride == 2, "kernel specialized to the module defaults (k=3, s=2)"

    L_conv = (L - K) // stride + 1
    L_pool = L_conv // 2
    assert L_pool >= 1
    C_out_pad = _round_up(C_out, 8)

    # ---- lane-tile sizing: large tiles (amortize ~0.35us/step), bounded VMEM ----------
    # per-lane bytes = double-buffered xp block (bf16) + double-buffered out block (f32)
    per_lane_bytes = 2 * (4 * C_in) * 2 + 2 * C_out_pad * 4
    tl_cap = max(128, ((8 << 20) // per_lane_bytes) // 128 * 128)
    if max_lane_tile is not None:
        tl_cap = max(128, (max_lane_tile // 128) * 128)
    n_t = _cdiv(L_pool, tl_cap)
    TL = _round_up(_cdiv(L_pool, n_t), 128)
    num_tiles = _cdiv(L_pool, TL)
    Lq_pad = num_tiles * TL + 128          # extra 128 lanes so every halo block is in-bounds

    # ---- single repack pass over x: residue split + bf16 cast (replaces 3x im2col) ----
    L4 = _round_up(L, 4)
    Lq = L4 // 4
    x4 = jnp.pad(x, ((0, 0), (0, 0), (0, L4 - L)))
    xp = jnp.transpose(x4.reshape(N, C_in, Lq, 4), (0, 3, 1, 2))      # (N, 4, C_in, Lq)
    xp = xp.reshape(N, 4 * C_in, Lq).astype(jnp.bfloat16)
    xp = jnp.pad(xp, ((0, 0), (0, 0), (0, Lq_pad - Lq)))              # zero-pad lanes

    # ---- phase-expanded conv weight: (2*C_out_pad, 5*C_in), bf16 ----------------------
    wf = w.astype(jnp.float32)
    W = jnp.zeros((2 * C_out_pad, 5 * C_in), jnp.float32)
    for k in range(K):                       # even pool phase: x[4l + k]   -> residue k
        W = W.at[:C_out, k * C_in:(k + 1) * C_in].set(wf[:, :, k])
    for k in range(K):                       # odd pool phase:  x[4l + 2+k] -> residue k+2
        r = k + 2                            # (r == 4 uses the shifted residue-0 rows)
        col = r * C_in if r < 4 else 4 * C_in
        W = W.at[C_out_pad:C_out_pad + C_out, col:col + C_in].set(wf[:, :, k])
    W = W.astype(jnp.bfloat16)

    # ---- folded BatchNorm (inference): per-channel scale / shift ----------------------
    scale = (gamma.astype(jnp.float32) * lax.rsqrt(running_var.astype(jnp.float32) + eps))
    shift = beta.astype(jnp.float32) - running_mean.astype(jnp.float32) * scale
    scale_p = jnp.zeros((C_out_pad,), jnp.float32).at[:C_out].set(scale)
    shift_p = jnp.zeros((C_out_pad,), jnp.float32).at[:C_out].set(shift)
    scale2 = jnp.tile(scale_p, 2).reshape(2 * C_out_pad, 1)
    shift2 = jnp.tile(shift_p, 2).reshape(2 * C_out_pad, 1)

    halo_stride = TL // 128

    out_full = pl.pallas_call(
        conv_block_kernel,
        out_shape=jax.ShapeDtypeStruct((N, C_out_pad, num_tiles * TL), jnp.float32),
        grid=(N, num_tiles),
        in_specs=[
            # main residue-split block (pipelined over the lane-tile axis)
            pl.BlockSpec((None, 4 * C_in, TL), lambda n, j: (n, 0, j)),
            # 128-lane halo of the same array (first column of the next tile)
            pl.BlockSpec((None, 4 * C_in, 128),
                         lambda n, j: (n, 0, (j + 1) * halo_stride)),
            # resident (grid-invariant) weight and folded-BN params
            pl.BlockSpec((2 * C_out_pad, 5 * C_in), lambda n, j: (0, 0)),
            pl.BlockSpec((2 * C_out_pad, 1), lambda n, j: (0, 0)),
            pl.BlockSpec((2 * C_out_pad, 1), lambda n, j: (0, 0)),
        ],
        out_specs=pl.BlockSpec((None, C_out_pad, TL), lambda n, j: (n, 0, j)),
        compiler_params=pltpu.CompilerParams(
            dimension_semantics=("parallel", "parallel"),
            vmem_limit_bytes=32 * 1024 * 1024,
        ),
    )(xp, xp, W, scale2, shift2)

    if C_out_pad == C_out and num_tiles * TL == L_pool:
        return out_full
    return out_full[:, :C_out, :L_pool]


def reference_forward(x, w, gamma, beta, mean, var, stride=2, eps=1e-5):
    """Pure-JAX reference: Conv1d -> ReLU -> BN(eval) -> MaxPool1d(2,2)."""
    conv = lax.conv_general_dilated(x, w, (stride,), 'VALID',
                                    dimension_numbers=('NCH', 'OIH', 'NCH'))
    y = jnp.maximum(conv, 0.0)
    scale = gamma * lax.rsqrt(var + eps)
    shift = beta - mean * scale
    y = y * scale[None, :, None] + shift[None, :, None]
    L_conv = y.shape[-1]
    L_pool = L_conv // 2
    y = y[..., :2 * L_pool].reshape(y.shape[0], y.shape[1], L_pool, 2)
    return y.max(-1)


if __name__ == "__main__":
    key = jax.random.PRNGKey(0)
    N, C_in, C_out, L, K = 2, 4, 8, 32, 3

    kx, kw, kx2 = jax.random.split(key, 3)
    x = jax.random.normal(kx, (N, C_in, L), jnp.float32)

    # Conv1d weight (C_out, C_in, K); bias=False since bn=True. Deterministic init.
    bound = 1.0 / (C_in * K) ** 0.5
    w = jax.random.uniform(kw, (C_out, C_in, K), jnp.float32, -bound, bound)

    # BatchNorm parameters at PyTorch defaults (inference-mode BN).
    gamma = jnp.ones((C_out,), jnp.float32)
    beta = jnp.zeros((C_out,), jnp.float32)
    running_mean = jnp.zeros((C_out,), jnp.float32)
    running_var = jnp.ones((C_out,), jnp.float32)

    fwd = jax.jit(conv_block_forward)
    out = jax.block_until_ready(fwd(x, w, gamma, beta, running_mean, running_var))

    L_pool = ((L - K) // 2 + 1) // 2
    assert out.shape == (N, C_out, L_pool), out.shape

    # Compare against the reference on bf16-rounded inputs (the kernel's intentional
    # operand quantization); remaining diff is only f32 accumulation order.
    x_q = x.astype(jnp.bfloat16).astype(jnp.float32)
    w_q = w.astype(jnp.bfloat16).astype(jnp.float32)
    ref = reference_forward(x_q, w_q, gamma, beta, running_mean, running_var)
    err = float(jnp.max(jnp.abs(out - ref)))
    assert err < 1e-3, err

    # Second (eager) check exercising multiple lane tiles and the cross-tile halo path.
    L2 = 2400
    x2 = jax.random.normal(kx2, (N, C_in, L2), jnp.float32)
    out2 = jax.block_until_ready(
        conv_block_forward(x2, w, gamma, beta, running_mean, running_var,
                           max_lane_tile=128))
    L_pool2 = ((L2 - K) // 2 + 1) // 2
    assert out2.shape == (N, C_out, L_pool2), out2.shape
    x2_q = x2.astype(jnp.bfloat16).astype(jnp.float32)
    ref2 = reference_forward(x2_q, w_q, gamma, beta, running_mean, running_var)
    err2 = float(jnp.max(jnp.abs(out2 - ref2)))
    assert err2 < 1e-3, err2

    print("KERNEL_OK")
</pallas_src>

<mosaic_0001>
module attributes {stable_mosaic.version = 11 : i64} {
  func.func @conv_block_kernel(%arg0: i32, %arg1: i32, %arg2: memref<1x16x128xbf16, #tpu.memory_space<vmem>>, %arg3: memref<1x16x128xbf16, #tpu.memory_space<vmem>>, %arg4: memref<16x20xbf16, #tpu.memory_space<vmem>>, %arg5: memref<16x1xf32, #tpu.memory_space<vmem>>, %arg6: memref<16x1xf32, #tpu.memory_space<vmem>>, %arg7: memref<1x8x128xf32, #tpu.memory_space<vmem>>) attributes {dimension_semantics = [#tpu.dimension_semantics<parallel>, #tpu.dimension_semantics<parallel>], iteration_bounds = array<i64: 2, 1>, scalar_prefetch = 0 : i64, scratch_operands = 0 : i64, tpu.core_type = #tpu.core_type<tc>, window_params = [{transform_indices = @transform_0, window_bounds = array<i64: 1, 16, 128>}, {transform_indices = @transform_1, window_bounds = array<i64: 1, 16, 128>}, {pipeline_mode = #tpu.pipeline_mode<synchronous>, transform_indices = @transform_2, window_bounds = array<i64: 16, 20>}, {pipeline_mode = #tpu.pipeline_mode<synchronous>, transform_indices = @transform_3, window_bounds = array<i64: 16, 1>}, {pipeline_mode = #tpu.pipeline_mode<synchronous>, transform_indices = @transform_4, window_bounds = array<i64: 16, 1>}, {transform_indices = @transform_5, window_bounds = array<i64: 1, 8, 128>}]} {
    %c0 = arith.constant 0 : index
    %c0_0 = arith.constant 0 : index
    %c0_1 = arith.constant 0 : index
    %0 = vector.load %arg2[%c0, %c0_0, %c0_1] : memref<1x16x128xbf16, #tpu.memory_space<vmem>>, vector<1x16x128xbf16>
    %1 = vector.shape_cast %0 : vector<1x16x128xbf16> to vector<16x128xbf16>
    %c0_2 = arith.constant 0 : index
    %c0_3 = arith.constant 0 : index
    %c0_4 = arith.constant 0 : index
    %2 = vector.load %arg3[%c0_2, %c0_3, %c0_4] : memref<1x16x128xbf16, #tpu.memory_space<vmem>>, vector<1x16x128xbf16>
    %3 = vector.shape_cast %2 : vector<1x16x128xbf16> to vector<16x128xbf16>
    %4 = vector.extract_strided_slice %1 {offsets = [0, 1], sizes = [4, 127], strides = [1, 1]} : vector<16x128xbf16> to vector<4x127xbf16>
    %5 = vector.extract_strided_slice %3 {offsets = [0, 0], sizes = [4, 1], strides = [1, 1]} : vector<16x128xbf16> to vector<4x1xbf16>
    %6 = tpu.concatenate %4, %5 in 1 : vector<4x127xbf16>, vector<4x1xbf16> -> vector<4x128xbf16>
    %7 = tpu.concatenate %1, %6 in 0 : vector<16x128xbf16>, vector<4x128xbf16> -> vector<20x128xbf16>
    %c0_5 = arith.constant 0 : index
    %c0_6 = arith.constant 0 : index
    %8 = vector.load %arg4[%c0_5, %c0_6] : memref<16x20xbf16, #tpu.memory_space<vmem>>, vector<16x20xbf16>
    %cst = arith.constant dense<0.000000e+00> : vector<16x128xf32>
    %9 = tpu.matmul %8, %7, %cst {dimension_numbers = #tpu.dot_dimension_numbers<[1], [0], [0], [1], [0, 0, 1, 1], [], []>} : vector<16x20xbf16>, vector<20x128xbf16>, vector<16x128xf32> -> vector<16x128xf32>
    %cst_7 = arith.constant 0.000000e+00 : f32
    %10 = vector.broadcast %cst_7 : f32 to vector<16x128xf32>
    %11 = arith.maximumf %9, %10 : vector<16x128xf32>
    %c0_8 = arith.constant 0 : index
    %c0_9 = arith.constant 0 : index
    %12 = vector.load %arg5[%c0_8, %c0_9] : memref<16x1xf32, #tpu.memory_space<vmem>>, vector<16x1xf32>
    %13 = vector.broadcast %12 : vector<16x1xf32> to vector<16x128xf32>
    %14 = arith.mulf %11, %13 : vector<16x128xf32>
    %c0_10 = arith.constant 0 : index
    %c0_11 = arith.constant 0 : index
    %15 = vector.load %arg6[%c0_10, %c0_11] : memref<16x1xf32, #tpu.memory_space<vmem>>, vector<16x1xf32>
    %16 = vector.broadcast %15 : vector<16x1xf32> to vector<16x128xf32>
    %17 = arith.addf %14, %16 : vector<16x128xf32>
    %18 = vector.extract_strided_slice %17 {offsets = [0, 0], sizes = [8, 128], strides = [1, 1]} : vector<16x128xf32> to vector<8x128xf32>
    %19 = vector.extract_strided_slice %17 {offsets = [8, 0], sizes = [8, 128], strides = [1, 1]} : vector<16x128xf32> to vector<8x128xf32>
    %20 = arith.maximumf %18, %19 : vector<8x128xf32>
    %c0_12 = arith.constant 0 : index
    %c0_13 = arith.constant 0 : index
    %c0_14 = arith.constant 0 : index
    %21 = vector.load %arg7[%c0_12, %c0_13, %c0_14] : memref<1x8x128xf32, #tpu.memory_space<vmem>>, vector<1x8x128xf32>
    %22 = vector.shape_cast %21 : vector<1x8x128xf32> to vector<8x128xf32>
    %23 = vector.shape_cast %20 : vector<8x128xf32> to vector<1x8x128xf32>
    tpu.vector_store %arg7[%c0_12, %c0_13, %c0_14], %23 {strides = array<i32>} : memref<1x8x128xf32, #tpu.memory_space<vmem>>, vector<1x8x128xf32>,
    return
  }
  func.func @transform_0(%arg0: i32, %arg1: i32) -> (i32, i32, i32) {
    %c0_i32 = arith.constant 0 : i32
    %c0_i32_0 = arith.constant 0 : i32
    return %arg0, %c0_i32, %arg1 : i32, i32, i32
  }
  func.func @transform_1(%arg0: i32, %arg1: i32) -> (i32, i32, i32) {
    %c1_i32 = arith.constant 1 : i32
    %0 = arith.addi %arg1, %c1_i32 : i32
    %c1_i32_0 = arith.constant 1 : i32
    %1 = arith.muli %0, %c1_i32_0 : i32
    %c0_i32 = arith.constant 0 : i32
    %c0_i32_1 = arith.constant 0 : i32
    return %arg0, %c0_i32, %1 : i32, i32, i32
  }
  func.func @transform_2(%arg0: i32, %arg1: i32) -> (i32, i32) {
    %c0_i32 = arith.constant 0 : i32
    %c0_i32_0 = arith.constant 0 : i32
    %c0_i32_1 = arith.constant 0 : i32
    return %c0_i32, %c0_i32_0 : i32, i32
  }
  func.func @transform_3(%arg0: i32, %arg1: i32) -> (i32, i32) {
    %c0_i32 = arith.constant 0 : i32
    %c0_i32_0 = arith.constant 0 : i32
    %c0_i32_1 = arith.constant 0 : i32
    return %c0_i32, %c0_i32_0 : i32, i32
  }
  func.func @transform_4(%arg0: i32, %arg1: i32) -> (i32, i32) {
    %c0_i32 = arith.constant 0 : i32
    %c0_i32_0 = arith.constant 0 : i32
    %c0_i32_1 = arith.constant 0 : i32
    return %c0_i32, %c0_i32_0 : i32, i32
  }
  func.func @transform_5(%arg0: i32, %arg1: i32) -> (i32, i32, i32) {
    %c0_i32 = arith.constant 0 : i32
    %c0_i32_0 = arith.constant 0 : i32
    return %arg0, %c0_i32, %arg1 : i32, i32, i32
  }
}

</mosaic_0001>

<bundles_post_ra>
// kernel: tile.18
= control target key start
LH: loop header
LB: loop body
LE: loop exit
PB: predicated region body
PF: predicated region fallthrough
CT: control target
= control target key end

     0   :  { %s22_s0 = inlined_call_operand.vmem [shape: f32[8], index: 0, kind: input, shape index: {}]   ;;  %s23_s1 = inlined_call_operand.vmem [shape: f32[2,8], index: 1, kind: output, shape index: {}]  }
   0x1   :  { %v4_v0 = vld [vmem:[%s22_s0] ss:$0 sm:$0xff] }
   0x2   :  { %5 = vst [vmem:[%s23_s1] sm:$0x3] %v4_v0 }

// kernel: tile.0
= control target key start
LH: loop header
LB: loop body
LE: loop exit
PB: predicated region body
PF: predicated region fallthrough
CT: control target
= control target key end

     0   :  { %s66_s8 = smov 125   ;;  %vm7_vm0 = vcmask 7168   ;;  %s67_s11 = smov 126   ;;  %s117_s0 = inlined_call_operand.vmem [shape: f32[2,8], index: 0, kind: input, shape index: {}]   ;;  %s118_s1 = inlined_call_operand.vmem [shape: f32[16,1], index: 1, kind: output, shape index: {}]  }
   0x1   :  { %v4_v0 = vld [vmem:[%s117_s0] sm:$0x3]  ;;  %s65_s0 = smov 127   ;;  %s68_s12 = smov 124  }
   0x2   :  { %5 = vst [vmem:[#allocation0] sm:$0x3] %v4_v0  ;;  %s69_s13 = smov 123   ;;  %s70_s14 = smov 122  }
   0x3   :  { %s71_s15 = smov 121  }
   0x9   :  { %v9_v1 = vld [vmem:[#allocation0] sm:$0x3]  }
   0xa   :  { %v21_v2 = vld [vmem:[#allocation0] sm:$0x3]   ;;  %10 = vrot.lane.b32.xlu0 %v9_v1, %s65_s0 }
   0xb   :  { %22 = vrot.lane.b32.xlu1 %v21_v2, %s66_s8  ;;  %v15_v3 = vld [vmem:[#allocation0] sm:$0x3]  }
   0xc   :  { %v27_v4 = vld [vmem:[#allocation0] sm:$0x3]  }
   0xd   :  { %v6_v5 = vld [vmem:[#allocation0] sm:$0x3]  }
   0xe   :  { %8 = vst.msk [vmem:[%s118_s1] ss:$8 sm:$0x3] %vm7_vm0, %v6_v5   ;;  %16 = vrot.lane.b32.xlu0 %v15_v3, %s67_s11  ;;  %v33_v6 = vld [vmem:[#allocation0] sm:$0x3]  }
   0xf   :  { %28 = vrot.lane.b32.xlu1 %v27_v4, %s68_s12  ;;  %v39_v7 = vld [vmem:[#allocation0] sm:$0x3]  }
  0x10   :  { %v45_v8 = vld [vmem:[#allocation0] sm:$0x3]  }
  0x12   :  { %34 = vrot.lane.b32.xlu0 %v33_v6, %s69_s13 }
  0x13   :  { %40 = vrot.lane.b32.xlu1 %v39_v7, %s70_s14 }
  0x16   :  { %46 = vrot.lane.b32.xlu0 %v45_v8, %s71_s15 }
  0x7c   :  { %v11_v9 = vpop.permute.xlu0 %10  }
  0x7d   :  { %v23_v10 = vpop.permute.xlu1 %22   ;;  %51 = vst.msk [vmem:[%s118_s1 + $0x1] ss:$8 sm:$0x3] %vm7_vm0, %v11_v9  }
  0x7e   :  { %53 = vst.msk [vmem:[%s118_s1 + $0x3] ss:$8 sm:$0x3] %vm7_vm0, %v23_v10  }
  0x80   :  { %v17_v11 = vpop.permute.xlu0 %16  }
  0x81   :  { %v29_v12 = vpop.permute.xlu1 %28   ;;  %52 = vst.msk [vmem:[%s118_s1 + $0x2] ss:$8 sm:$0x3] %vm7_vm0, %v17_v11  }
  0x82   :  { %54 = vst.msk [vmem:[%s118_s1 + $0x4] ss:$8 sm:$0x3] %vm7_vm0, %v29_v12  }
  0x84   :  { %v35_v13 = vpop.permute.xlu0 %34  }
  0x85   :  { %v41_v14 = vpop.permute.xlu1 %40   ;;  %55 = vst.msk [vmem:[%s118_s1 + $0x5] ss:$8 sm:$0x3] %vm7_vm0, %v35_v13  }
  0x86   :  { %56 = vst.msk [vmem:[%s118_s1 + $0x6] ss:$8 sm:$0x3] %vm7_vm0, %v41_v14  }
  0x88   :  { %v47_v15 = vpop.permute.xlu0 %46  }
  0x89   :  { %57 = vst.msk [vmem:[%s118_s1 + $0x7] ss:$8 sm:$0x3] %vm7_vm0, %v47_v15  }

// kernel: conv_block_forward.1
= control target key start
LH: loop header
LB: loop body
LE: loop exit
PB: predicated region body
PF: predicated region fallthrough
CT: control target
= control target key end

     0   :  { %s734_s18 = smov 0   ;;  %s736_s19 = smov 0   ;;  %s828_s0 = inlined_call_operand.vmem [shape: bf16[2,16,256], index: 0, kind: input, shape index: {}, may-alias: {0,1}]   ;;  %s829_s1 = inlined_call_operand.vmem [shape: bf16[2,16,256], index: 1, kind: input, shape index: {}, may-alias: {0,1}]   ;;  %s830_s2 = inlined_call_operand.vmem [shape: bf16[16,20], index: 2, kind: input, shape index: {}]   ;;  %s831_s3 = inlined_call_operand.vmem [shape: f32[16,1], index: 3, kind: input, shape index: {}]   ;;  %s832_s4 = inlined_call_operand.vmem [shape: f32[16,1], index: 4, kind: input, shape index: {}]   ;;  %s833_s5 = inlined_call_operand.vmem [shape: f32[2,8,128], index: 5, kind: output, shape index: {}]  }
   0x1   :  { %s738_s20 = smov 0   ;;  %s740_s21 = smov 0  }
   0x2   :  { %s742_s22 = smov 0  }
   0x3 LB: > { %s27_s23 = sadd.s32 1, %s694_s21  ;;  %p43_p1 = scmp.ne.s32.totalorder %s686_s19, %s682_s18  ;;  %s698_s22 = sphi %s742_s22, %s15_s22   ;;  %s694_s21 = sphi %s740_s21, %s838_s21   ;;  %s690_s20 = sphi %s738_s20, %s837_s20   ;;  %s686_s19 = sphi %s736_s19, %s836_s19   ;;  %s682_s18 = sphi %s734_s18, %s835_s18  }
   0x4   : > { %p29_p0 = scmp.ge.s32.totalorder %s27_s23, 2  ;;  %p44_p2 = scmp.eq.s32.totalorder %s698_s22, 0 }
   0x5   : > { %s36_s26 = sadd.s32 1, %s686_s19  ;;  %p577_p5 = scmp.ge.s32.totalorder %s698_s22, 2 }
   0x6   : > { %s840_s23 = smov (%p29_p0, %s27_s23), 0  ;;  %p765_p3 = por %p44_p2, %p43_p1 }
   0x7   : > { %s31_s25 = ssub.s32 %s694_s21, %s840_s23  ;;  %199 = sbr.rel (%p577_p5) target bundleno = 28 (0x1c), region = 28 }
   0x8   : > { %p34_p4 = scmp.eq.s32.totalorder %s31_s25, 0 }
   0xa   : > { %s773_s27 = scalar_select %p34_p4, %s686_s19, %s36_s26  }
   0xe   : > { %202 = sbr.rel (!%p765_p3) target bundleno = 21 (0x15), region = 32  ;;  %s204_s28 = sand.u32 (%p765_p3), 1, %s686_s19  }
   0xf   : > { %s597_s29 = sshll.u32 (%p765_p3), %s694_s21, 4  ;;  %s578_s30 = sshll.u32 (%p765_p3), %s204_s28, 3 }
  0x10   : > { %s210_s8 = scalar_lea.vmem (%p765_p3), %s828_s0, %s597_s29  ;;  %s206_s9 = scalar_lea.vmem (%p765_p3), [#allocation2], %s578_s30 }
  0x11   : > { %v226_v0 = vld [vmem:[%s210_s8] sm:$0xf] (%p765_p3)  ;;  %v228_v1 = vld [vmem:[%s210_s8 + $0x8] sm:$0xf] (%p765_p3) }
  0x12   : > { %227 = vst [vmem:[%s206_s9] sm:$0xf] (%p765_p3), %v226_v0  ;;  %229 = vst [vmem:[%s206_s9 + $0x4] sm:$0xf] (%p765_p3), %v228_v1 }
  0x15 PF: > { %256 = sbr.rel (!%p765_p3) target bundleno = 28 (0x1c), region = 73  ;;  %s258_s10 = sand.u32 (%p765_p3), 1, %s686_s19  }
  0x16   : > { %s598_s11 = sshll.u32 (%p765_p3), %s694_s21, 4  ;;  %s581_s12 = sshll.u32 (%p765_p3), %s258_s10, 3 }
  0x17   : > { %s510_s15 = scalar_lea.vmem (%p765_p3), %s829_s1, %s598_s11  ;;  %s260_s16 = scalar_lea.vmem (%p765_p3), [#allocation3], %s581_s12 }
  0x18   : > { %v584_v2 = vld [vmem:[%s510_s15 + $0x4] sm:$0xf] (%p765_p3)  ;;  %v585_v3 = vld [vmem:[%s510_s15 + $0xc] sm:$0xf] (%p765_p3) }
  0x19   : > { %282 = vst [vmem:[%s260_s16] sm:$0xf] (%p765_p3), %v584_v2  ;;  %284 = vst [vmem:[%s260_s16 + $0x4] sm:$0xf] (%p765_p3), %v585_v3 }
  0x1c PF: > { %p586_p6 = scmp.ge.s32.totalorder %s698_s22, 1  ;;  %p310_p7 = scmp.lt.s32.totalorder %s698_s22, 3 }
  0x1e   : > { %p311_p8 = pnand %p586_p6, %p310_p7 }
  0x1f   : > { %s317_s17 = sand.u32 (!%p311_p8), 1, %s682_s18   ;;  %v700_v4 = vmov (!%p311_p8), 0.0   ;;  %vm701_vm0 = vmmov (!%p311_p8), 0   ;;  %v444_v5 = vld [vmem:[%s831_s3] sm:$0xff] (!%p311_p8)  ;;  %v702_v7 = vmov (!%p311_p8), 0   ;;  %v445_v11 = vld [vmem:[%s831_s3 + $0x8] sm:$0xff] (!%p311_p8) }
  0x20   : > { %314 = sbr.rel (%p311_p8) target bundleno = 384 (0x180), region = 114  ;;  %s587_s24 = sshll.u32 (!%p311_p8), %s317_s17, 3  ;;  %602 = vmatprep.subr.bf16.mxu0 (!%p311_p8), %v700_v4  ;;  %606 = vmatprep.mubr.msk.bf16.mxu0 (!%p311_p8), %vm701_vm0, %v700_v4  ;;  %v459_v13 = vld [vmem:[%s832_s4 + $0x8] sm:$0xff] (!%p311_p8)  ;;  %v458_v14 = vld [vmem:[%s832_s4] sm:$0xff] (!%p311_p8)  ;;  %vm379_vm1 = vcmask (!%p311_p8), 1039360   ;;  %vm398_vm2 = vcmask (!%p311_p8), 1041408  }
  0x21   : > { %s319_s28 = scalar_lea.vmem (!%p311_p8), [#allocation2], %s587_s24  ;;  %s326_s29 = scalar_lea.vmem (!%p311_p8), [#allocation3], %s587_s24  ;;  %654 = vset.pattern.permute.xlu1 (!%p311_p8), %v702_v7  ;;  %655 = vset.pattern.permute.xlu0 (!%p311_p8), %v702_v7  ;;  %v659_v19 = vld [vmem:[%s830_s2] sm:$0xff] (!%p311_p8)   ;;  %vm394_vm3 = vcmask (!%p311_p8), 162816  }
  0x22   : > { %v366_v6 = vld [vmem:[%s319_s28] sm:$0xf] (!%p311_p8)  ;;  %v367_v9 = vld [vmem:[%s319_s28 + $0x4] sm:$0xf] (!%p311_p8)  ;;  %448 = vperm.xlu1 (!%p311_p8), %654, %v444_v5   ;;  %s703_s6 = smov (!%p311_p8), 127   ;;  %p358_p9 = scmp.lt.s32.totalorder (!%p311_p8), %s690_s20, 1 }
  0x23   : > { %v590_v8 = vcombine.low (!%p311_p8), %v366_v6, %v366_v6  ;;  %v592_v10 = vcombine.low (!%p311_p8), %v366_v6, %v367_v9  ;;  %v657_v12 = vld [vmem:[%s326_s29] ss:$0 sps:$4 sm:$0xff] (!%p311_p8)  }
  0x25   : > { %372 = vrot.lane.b32.xlu0 (!%p311_p8), %v590_v8, %s703_s6  ;;  %603 = vmatpush3.bf16.msra.mxu0 (!%p311_p8), %v592_v10 }
  0x26   : > { %604 = vmatprep.subr.bf16.mxu0 (!%p311_p8), %v700_v4  ;;  %453 = vperm.xlu1 (!%p311_p8), %654, %v445_v11  }
  0x27   : > { %s842_s20 = smov (!%p358_p9, %s690_s20), 1 }
  0x28   : > { %s589_s13 = sshll.u32 %s842_s20, 3 }
  0x29   : > { %377 = vrot.lane.b32.xlu0 %v657_v12, %s703_s6  ;;  %s364_s16 = scalar_lea.vmem %s833_s5, %s589_s13 }
  0x2a   : > { %467 = vperm.xlu1 %654, %v459_v13  }
  0x2d   : > { %462 = vperm.xlu0 %655, %v458_v14  }
  0x97   : > { %v373_v15 = vpop.permute.xlu0 %372 }
  0x9b   : > { %v378_v16 = vpop.permute.xlu0 %377 }
  0x9c   : > { %v382_v17 = vsel %vm379_vm1, %v373_v15, %v378_v16 }
  0x9d   : > { %v399_v18 = vsel %vm398_vm2, %v382_v17, 0 }
  0x9e   : > { %605 = vmatpush3.bf16.msra.mxu0 %v399_v18 }
  0xa1   : > { %607 = vmatmul.mubr.msk.bf16.vlgmr.msra.gmra.mrb[0].mxu0 %vm394_vm3, %v659_v19  ;;  %v449_v20 = vpop.permute.xlu1 %448 }
  0xa5   : > { %v454_v21 = vpop.permute.xlu1 %453 }
  0xa9   : > { %v468_v31 = vpop.permute.xlu1 %467 }
  0xac   : > { %v463_v29 = vpop.permute.xlu0 %462 }
 0x174   : > { %v435_v22 = vpop.f32.mrb[0].mxu0 }
 0x175   : > { %v442_v23 = vmax.f32 %v435_v22, 0.0  ;;  %v608_v24 = vpop.f32.mrb[1].mxu0 }
 0x176   : > { %v438_v25 = vpop.f32.mrb[2].mxu0 }
 0x177   : > { %v443_v26 = vmax.f32 %v438_v25, 0.0  ;;  %v609_v27 = vpop.f32.mrb[3].mxu0  ;;  %v456_v28 = vmul.f32 %v449_v20, %v442_v23 }
 0x179   : > { %v457_v30 = vmul.f32 %v454_v21, %v443_v26  ;;  %v470_v33 = vadd.f32 %v463_v29, %v456_v28 }
 0x17b   : > { %v471_v32 = vadd.f32 %v468_v31, %v457_v30 }
 0x17d   : > { %v472_v34 = vmax.f32 %v470_v33, %v471_v32 }
 0x17f   : > { %473 = vst [vmem:[%s364_s16] sm:$0xff] %v472_v34 }
 0x180 PF: > { %s15_s22 = sadd.s32 1, %s698_s22   ;;  %s835_s18 = smov %s686_s19 }
 0x181   : > { %p12_p10 = scmp.ge.s32.totalorder %s15_s22, 4   ;;  %s836_s19 = smov %s773_s27 }
 0x182   : > { %s837_s20 = smov %s694_s21  ;;  %s838_s21 = smov %s840_s23 }
 0x183   :  { %14 = sbr.rel (!%p12_p10) target bundleno = 3 (0x3), region = 165 }

</bundles_post_ra>
